<compile_context>
chip_gen: v7x
topology: tpu7x:2x2x1
jax: 0.10.0
libtpu: 0.0.40
codegen_flags: <defaults>
</compile_context>

<pallas_src>
import jax
import jax.numpy as jnp
from jax.experimental import pallas as pl
from jax.experimental.pallas import tpu as pltpu


def _mase_snn_kernel(seqs_ref, mn_ref, wc_ref, bc1_ref, bc2_ref, out_ref,
                     pool_acc, rs_acc):
    """Streamed masked pooling + fused (timestep-collapsed) classifier head."""
    s = pl.program_id(1)

    @pl.when(s == 0)
    def _():
        pool_acc[...] = jnp.zeros_like(pool_acc)
        rs_acc[...] = jnp.zeros_like(rs_acc)

    # seqs streamed in bf16; upcast and accumulate in f32 (v5e has no bf16 VPU
    # path and f32 accumulation is needed over long S anyway).
    x = seqs_ref[...].astype(jnp.float32)          # [TB, TS, H]
    mn = mn_ref[...]                               # [TB, TS, 1] pre-normalised mask
    pool_acc[...] += jnp.sum(x * mn, axis=1)       # [TB, H]
    rs_acc[...] += jnp.sum(mn, axis=1)             # [TB, 1] mask fraction (1 unless fully masked)

    @pl.when(s == pl.num_programs(1) - 1)
    def _():
        acc = jnp.dot(pool_acc[...].astype(wc_ref.dtype), wc_ref[...],
                      preferred_element_type=jnp.float32)            # [TB, Cp]
        out_ref[...] = acc + rs_acc[...] * bc1_ref[...] + bc2_ref[...]


def _pick_tile(dim, target, quantum):
    """Largest divisor of `dim` <= target that is a multiple of `quantum` (or dim)."""
    cands = [d for d in range(1, dim + 1)
             if dim % d == 0 and (d % quantum == 0 or d == dim)]
    under = [d for d in cands if d <= target]
    return max(under) if under else dim


def mase_snn_forward(seqs, masks, segments, labels, params, *,
                     level, time_step=2000, tb=None, ts=None):
    """Pallas implementation of MASE_SNNWrapper.forward (Encoding_type='rate').

    Returns (accu, count) matching the PyTorch wrapper's return signature.
    segments / labels are accepted for signature parity; the synthetic
    classifier head does not consume them.
    """
    del segments, labels  # TODO(synk): unused by the synthetic wrapped model.

    B, S, H = seqs.shape
    C = params["w2"].shape[1]
    n_steps = int(min(level, time_step))

    LANE = 128
    Cp = -(-C // LANE) * LANE

    # Tile selection: tiles must divide the dims and be a multiple of 8 (or the
    # full extent) to satisfy the (8, 128) block rule on out / seqs blocks.
    if tb is None or B % tb != 0 or (tb % 8 != 0 and tb != B):
        tb = _pick_tile(B, 8, 8)
    if ts is None or S % ts != 0 or (ts % 8 != 0 and ts != S):
        ts = _pick_tile(S, 512, 8)

    # Stream seqs in bf16 (halves the dominant HBM read + VMEM tile); no padded
    # copy of the large [B, S, H] array is ever materialised.
    seqs_bf = seqs if seqs.dtype == jnp.bfloat16 else seqs.astype(jnp.bfloat16)

    # Pre-normalised mask, laid out (B, S, 1) so it shares seqs' sublane layout
    # (no lane<->sublane relayout, no in-kernel max/divide).
    masks_f = masks.astype(jnp.float32)
    msum = jnp.maximum(jnp.sum(masks_f, axis=1, keepdims=True), 1.0)
    mn = (masks_f / msum)[..., None]                                # [B, S, 1]

    # Fold rate-encoding scale (1/level), the timestep count and both linear
    # layers into one weight/bias set (valid: head is linear & stateless).
    f32 = jnp.float32
    w1 = params["w1"].astype(f32)
    w2 = params["w2"].astype(f32)
    wc = (w1 @ w2) * (float(n_steps) / float(level))                # [H, C]
    bc1 = float(n_steps) * (params["b1"].astype(f32) @ w2)          # [1, C]
    bc2 = float(n_steps) * params["b2"].astype(f32)                 # [1, C]

    wc_p = jnp.zeros((H, Cp), f32).at[:, :C].set(wc).astype(jnp.bfloat16)
    bc1_p = jnp.zeros((1, Cp), f32).at[:, :C].set(bc1)
    bc2_p = jnp.zeros((1, Cp), f32).at[:, :C].set(bc2)

    grid = (B // tb, S // ts)

    accu_p = pl.pallas_call(
        _mase_snn_kernel,
        out_shape=jax.ShapeDtypeStruct((B, Cp), jnp.float32),
        grid_spec=pltpu.PrefetchScalarGridSpec(
            num_scalar_prefetch=0,
            grid=grid,
            in_specs=[
                pl.BlockSpec((tb, ts, H), lambda b, s: (b, s, 0)),  # seqs (bf16)
                pl.BlockSpec((tb, ts, 1), lambda b, s: (b, s, 0)),  # mask/msum
                pl.BlockSpec((H, Cp),     lambda b, s: (0, 0)),     # Wc
                pl.BlockSpec((1, Cp),     lambda b, s: (0, 0)),     # bc1
                pl.BlockSpec((1, Cp),     lambda b, s: (0, 0)),     # bc2
            ],
            out_specs=pl.BlockSpec((tb, Cp), lambda b, s: (b, 0)),
            scratch_shapes=[
                pltpu.VMEM((tb, H), jnp.float32),   # pooled-sum accumulator
                pltpu.VMEM((tb, 1), jnp.float32),   # mask-fraction accumulator
            ]),
        compiler_params=pltpu.CompilerParams(
            dimension_semantics=("parallel", "arbitrary"),
            # Explicit scoped-VMEM limit with headroom for v7x's 64 MiB VMEM;
            # plenty for v5e/v6e as well.
            vmem_limit_bytes=48 * 1024 * 1024),
    )(seqs_bf, mn, wc_p, bc1_p, bc2_p)

    # Slice the lane-dense padded class axis back to the logical shape.
    return accu_p[:, :C], n_steps


def _reference(seqs, masks, params, level, n_steps):
    """Pure-JAX reference: n_steps identical timesteps of the wrapped head."""
    x = seqs.astype(jnp.float32) / float(level)
    h = jnp.einsum("bsh,hk->bsk", x, params["w1"]) + params["b1"]
    masks = masks.astype(jnp.float32)
    msum = jnp.maximum(jnp.sum(masks, axis=1, keepdims=True), 1.0)
    pooled = jnp.sum(h * masks[:, :, None], axis=1) / msum
    logits = pooled @ params["w2"] + params["b2"]
    return float(n_steps) * logits


if __name__ == "__main__":
    key = jax.random.PRNGKey(0)
    B, S, H, C = 16, 16, 32, 4
    level = 8  # kwargs['level'] of the wrapper; also #rate-encoded timesteps

    k_seq, k_w1, k_b1, k_w2, k_b2 = jax.random.split(key, 5)

    seqs = jax.random.normal(k_seq, (B, S, H), dtype=jnp.float32)
    masks = jnp.ones((B, S), dtype=jnp.float32)
    masks = masks.at[1, S // 2:].set(0.0)   # ragged row (partial mask)
    masks = masks.at[B - 1, :].set(0.0)     # fully-masked row (n_steps*b2 path)
    segments = jnp.zeros((B, S), dtype=jnp.int32)
    labels = jnp.zeros((B,), dtype=jnp.int32)

    params = {
        "w1": 0.1 * jax.random.normal(k_w1, (H, H), dtype=jnp.float32),
        "b1": 0.1 * jax.random.normal(k_b1, (1, H), dtype=jnp.float32),
        "w2": 0.1 * jax.random.normal(k_w2, (H, C), dtype=jnp.float32),
        "b2": 0.1 * jax.random.normal(k_b2, (1, C), dtype=jnp.float32),
    }

    # tb/ts chosen so the test exercises a real (2, 2) grid with S-accumulation.
    accu, count = mase_snn_forward(seqs, masks, segments, labels, params,
                                   level=level, time_step=2000, tb=8, ts=8)
    accu = jax.block_until_ready(accu)

    assert accu.shape == (B, C) and count == level
    ref = _reference(seqs, masks, params, level, count)
    assert bool(jnp.all(jnp.isfinite(accu)))
    # Loose tolerance: seqs streamed as bf16 and bf16 MXU operands, f32 accum.
    assert bool(jnp.allclose(accu, ref, rtol=5e-2, atol=5e-2))
    print("KERNEL_OK")
</pallas_src>

<mosaic_0001>
module attributes {stable_mosaic.version = 11 : i64} {
  func.func @_mase_snn_kernel(%arg0: i32, %arg1: i32, %arg2: memref<8x8x32xbf16, #tpu.memory_space<vmem>>, %arg3: memref<8x8x1xf32, #tpu.memory_space<vmem>>, %arg4: memref<32x128xbf16, #tpu.memory_space<vmem>>, %arg5: memref<1x128xf32, #tpu.memory_space<vmem>>, %arg6: memref<1x128xf32, #tpu.memory_space<vmem>>, %arg7: memref<8x128xf32, #tpu.memory_space<vmem>>, %arg8: memref<8x32xf32, #tpu.memory_space<vmem>>, %arg9: memref<8x1xf32, #tpu.memory_space<vmem>>) attributes {dimension_semantics = [#tpu.dimension_semantics<parallel>, #tpu.dimension_semantics<arbitrary>], iteration_bounds = array<i64: 2, 2>, scalar_prefetch = 0 : i64, scratch_operands = 2 : i64, tpu.core_type = #tpu.core_type<tc>, window_params = [{transform_indices = @transform_0, window_bounds = array<i64: 8, 8, 32>}, {transform_indices = @transform_1, window_bounds = array<i64: 8, 8, 1>}, {pipeline_mode = #tpu.pipeline_mode<synchronous>, transform_indices = @transform_2, window_bounds = array<i64: 32, 128>}, {pipeline_mode = #tpu.pipeline_mode<synchronous>, transform_indices = @transform_3, window_bounds = array<i64: 1, 128>}, {pipeline_mode = #tpu.pipeline_mode<synchronous>, transform_indices = @transform_4, window_bounds = array<i64: 1, 128>}, {transform_indices = @transform_5, window_bounds = array<i64: 8, 128>}]} {
    %c0_i32 = arith.constant 0 : i32
    %0 = arith.cmpi eq, %arg1, %c0_i32 : i32
    %1 = arith.extui %0 : i1 to i32
    %c0_i32_0 = arith.constant 0 : i32
    %2 = arith.cmpi ne, %1, %c0_i32_0 : i32
    scf.if %2 {
      %cst_16 = arith.constant 0.000000e+00 : f32
      %19 = vector.broadcast %cst_16 : f32 to vector<8x32xf32>
      %c0_17 = arith.constant 0 : index
      %c0_18 = arith.constant 0 : index
      %20 = vector.load %arg8[%c0_17, %c0_18] : memref<8x32xf32, #tpu.memory_space<vmem>>, vector<8x32xf32>
      tpu.vector_store %arg8[%c0_17, %c0_18], %19 {strides = array<i32>} : memref<8x32xf32, #tpu.memory_space<vmem>>, vector<8x32xf32>,
      %cst_19 = arith.constant 0.000000e+00 : f32
      %21 = vector.broadcast %cst_19 : f32 to vector<8x1xf32>
      %c0_20 = arith.constant 0 : index
      %c0_21 = arith.constant 0 : index
      %22 = vector.load %arg9[%c0_20, %c0_21] : memref<8x1xf32, #tpu.memory_space<vmem>>, vector<8x1xf32>
      tpu.vector_store %arg9[%c0_20, %c0_21], %21 {strides = array<i32>} : memref<8x1xf32, #tpu.memory_space<vmem>>, vector<8x1xf32>,
    } else {
    }
    %c0 = arith.constant 0 : index
    %c0_1 = arith.constant 0 : index
    %c0_2 = arith.constant 0 : index
    %3 = vector.load %arg2[%c0, %c0_1, %c0_2] : memref<8x8x32xbf16, #tpu.memory_space<vmem>>, vector<8x8x32xbf16>
    %4 = arith.extf %3 : vector<8x8x32xbf16> to vector<8x8x32xf32>
    %c0_3 = arith.constant 0 : index
    %c0_4 = arith.constant 0 : index
    %c0_5 = arith.constant 0 : index
    %5 = vector.load %arg3[%c0_3, %c0_4, %c0_5] : memref<8x8x1xf32, #tpu.memory_space<vmem>>, vector<8x8x1xf32>
    %c0_6 = arith.constant 0 : index
    %c0_7 = arith.constant 0 : index
    %6 = vector.load %arg8[%c0_6, %c0_7] : memref<8x32xf32, #tpu.memory_space<vmem>>, vector<8x32xf32>
    %7 = vector.broadcast %5 : vector<8x8x1xf32> to vector<8x8x32xf32>
    %8 = arith.mulf %4, %7 : vector<8x8x32xf32>
    %cst = arith.constant dense<0.000000e+00> : vector<8x32xf32>
    %9 = vector.multi_reduction <add>, %8, %cst [1] : vector<8x8x32xf32> to vector<8x32xf32>
    %10 = arith.addf %6, %9 : vector<8x32xf32>
    %c0_8 = arith.constant 0 : index
    %c0_9 = arith.constant 0 : index
    %11 = vector.load %arg8[%c0_8, %c0_9] : memref<8x32xf32, #tpu.memory_space<vmem>>, vector<8x32xf32>
    tpu.vector_store %arg8[%c0_8, %c0_9], %10 {strides = array<i32>} : memref<8x32xf32, #tpu.memory_space<vmem>>, vector<8x32xf32>,
    %c0_10 = arith.constant 0 : index
    %c0_11 = arith.constant 0 : index
    %12 = vector.load %arg9[%c0_10, %c0_11] : memref<8x1xf32, #tpu.memory_space<vmem>>, vector<8x1xf32>
    %cst_12 = arith.constant dense<0.000000e+00> : vector<8x1xf32>
    %13 = vector.multi_reduction <add>, %5, %cst_12 [1] : vector<8x8x1xf32> to vector<8x1xf32>
    %14 = arith.addf %12, %13 : vector<8x1xf32>
    %c0_13 = arith.constant 0 : index
    %c0_14 = arith.constant 0 : index
    %15 = vector.load %arg9[%c0_13, %c0_14] : memref<8x1xf32, #tpu.memory_space<vmem>>, vector<8x1xf32>
    tpu.vector_store %arg9[%c0_13, %c0_14], %14 {strides = array<i32>} : memref<8x1xf32, #tpu.memory_space<vmem>>, vector<8x1xf32>,
    %c1_i32 = arith.constant 1 : i32
    %16 = arith.cmpi eq, %arg1, %c1_i32 : i32
    %17 = arith.extui %16 : i1 to i32
    %c0_i32_15 = arith.constant 0 : i32
    %18 = arith.cmpi ne, %17, %c0_i32_15 : i32
    scf.if %18 {
      %c0_16 = arith.constant 0 : index
      %c0_17 = arith.constant 0 : index
      %19 = vector.load %arg8[%c0_16, %c0_17] : memref<8x32xf32, #tpu.memory_space<vmem>>, vector<8x32xf32>
      %20 = arith.truncf %19 : vector<8x32xf32> to vector<8x32xbf16>
      %c0_18 = arith.constant 0 : index
      %c0_19 = arith.constant 0 : index
      %21 = vector.load %arg4[%c0_18, %c0_19] : memref<32x128xbf16, #tpu.memory_space<vmem>>, vector<32x128xbf16>
      %cst_20 = arith.constant dense<0.000000e+00> : vector<8x128xf32>
      %22 = tpu.matmul %20, %21, %cst_20 {dimension_numbers = #tpu.dot_dimension_numbers<[1], [0], [0], [1], [0, 0, 1, 1], [], []>} : vector<8x32xbf16>, vector<32x128xbf16>, vector<8x128xf32> -> vector<8x128xf32>
      %c0_21 = arith.constant 0 : index
      %c0_22 = arith.constant 0 : index
      %23 = vector.load %arg9[%c0_21, %c0_22] : memref<8x1xf32, #tpu.memory_space<vmem>>, vector<8x1xf32>
      %c0_23 = arith.constant 0 : index
      %c0_24 = arith.constant 0 : index
      %24 = vector.load %arg5[%c0_23, %c0_24] : memref<1x128xf32, #tpu.memory_space<vmem>>, vector<1x128xf32>
      %25 = vector.broadcast %23 : vector<8x1xf32> to vector<8x128xf32>
      %26 = vector.broadcast %24 : vector<1x128xf32> to vector<8x128xf32>
      %27 = arith.mulf %25, %26 : vector<8x128xf32>
      %28 = arith.addf %22, %27 : vector<8x128xf32>
      %c0_25 = arith.constant 0 : index
      %c0_26 = arith.constant 0 : index
      %29 = vector.load %arg6[%c0_25, %c0_26] : memref<1x128xf32, #tpu.memory_space<vmem>>, vector<1x128xf32>
      %30 = vector.broadcast %29 : vector<1x128xf32> to vector<8x128xf32>
      %31 = arith.addf %28, %30 : vector<8x128xf32>
      %c0_27 = arith.constant 0 : index
      %c0_28 = arith.constant 0 : index
      %32 = vector.load %arg7[%c0_27, %c0_28] : memref<8x128xf32, #tpu.memory_space<vmem>>, vector<8x128xf32>
      tpu.vector_store %arg7[%c0_27, %c0_28], %31 {strides = array<i32>} : memref<8x128xf32, #tpu.memory_space<vmem>>, vector<8x128xf32>,
    } else {
    }
    return
  }
  func.func @transform_0(%arg0: i32, %arg1: i32) -> (i32, i32, i32) {
    %c0_i32 = arith.constant 0 : i32
    %c0_i32_0 = arith.constant 0 : i32
    return %arg0, %arg1, %c0_i32 : i32, i32, i32
  }
  func.func @transform_1(%arg0: i32, %arg1: i32) -> (i32, i32, i32) {
    %c0_i32 = arith.constant 0 : i32
    %c0_i32_0 = arith.constant 0 : i32
    return %arg0, %arg1, %c0_i32 : i32, i32, i32
  }
  func.func @transform_2(%arg0: i32, %arg1: i32) -> (i32, i32) {
    %c0_i32 = arith.constant 0 : i32
    %c0_i32_0 = arith.constant 0 : i32
    %c0_i32_1 = arith.constant 0 : i32
    return %c0_i32, %c0_i32_0 : i32, i32
  }
  func.func @transform_3(%arg0: i32, %arg1: i32) -> (i32, i32) {
    %c0_i32 = arith.constant 0 : i32
    %c0_i32_0 = arith.constant 0 : i32
    %c0_i32_1 = arith.constant 0 : i32
    return %c0_i32, %c0_i32_0 : i32, i32
  }
  func.func @transform_4(%arg0: i32, %arg1: i32) -> (i32, i32) {
    %c0_i32 = arith.constant 0 : i32
    %c0_i32_0 = arith.constant 0 : i32
    %c0_i32_1 = arith.constant 0 : i32
    return %c0_i32, %c0_i32_0 : i32, i32
  }
  func.func @transform_5(%arg0: i32, %arg1: i32) -> (i32, i32) {
    %c0_i32 = arith.constant 0 : i32
    %c0_i32_0 = arith.constant 0 : i32
    return %arg0, %c0_i32 : i32, i32
  }
}

</mosaic_0001>

<bundles_post_ra>
// kernel: tpu_custom_call.1
= control target key start
LH: loop header
LB: loop body
LE: loop exit
PB: predicated region body
PF: predicated region fallthrough
CT: control target
= control target key end

     0   :  { %s1384_s0 = inlined_call_operand.vmem [shape: bf16[16,16,32], index: 0, kind: input, shape index: {}]   ;;  %s1385_s1 = inlined_call_operand.vmem [shape: f32[16,16,1], index: 1, kind: input, shape index: {}]   ;;  %s1386_s2 = inlined_call_operand.vmem [shape: bf16[32,128], index: 2, kind: input, shape index: {}]   ;;  %s1387_s3 = inlined_call_operand.vmem [shape: f32[1,128], index: 3, kind: input, shape index: {}]   ;;  %s1388_s4 = inlined_call_operand.vmem [shape: f32[1,128], index: 4, kind: input, shape index: {}]   ;;  %s1389_s5 = inlined_call_operand.hbm [shape: f32[16,128], index: 5, kind: output, shape index: {}]  }
   0x1   :  { %1391 = sst [smem:[#allocation10_spill]] %s1384_s0 }
   0x2   :  { %10 = vsyncpa [#allocation7], 0 }
   0x3   :  { %12 = vsyncpa [#allocation7 + $0x1], 0  ;;  %s1142_s18 = smov 0   ;;  %s1144_s19 = smov 0  }
   0x4   :  { %s1146_s20 = smov 0   ;;  %s1148_s21 = smov 0  }
   0x5   :  { %s1150_s22 = smov 0   ;;  %s1152_s23 = smov 0  }
   0x6   :  { %s1154_s24 = smov 0   ;;  %s1156_s25 = smov 0  }
   0x7   :  { %s1158_s26 = smov 0   ;;  %s1160_s27 = smov 0  }
   0x8 LB: > { %s838_s28 = sadd.s32 4294967295, %s1104_s27   ;;  %s839_s29 = sadd.s32 4294967294, %s1104_s27   ;;  %s1104_s27 = sphi %s1160_s27, %s18_s27   ;;  %s1100_s26 = sphi %s1158_s26, %s1406_s26   ;;  %s1096_s25 = sphi %s1156_s25, %s1405_s25   ;;  %s1092_s24 = sphi %s1154_s24, %s1404_s24   ;;  %s1088_s23 = sphi %s1152_s23, %s1403_s23   ;;  %s1084_s22 = sphi %s1150_s22, %s1402_s22   ;;  %s1080_s21 = sphi %s1148_s21, %s1401_s21   ;;  %s1076_s20 = sphi %s1146_s20, %s1400_s20   ;;  %s1072_s19 = sphi %s1144_s19, %s1399_s19   ;;  %s1068_s18 = sphi %s1142_s18, %s1398_s18  }
   0x9   : > { %s27_s30 = sadd.s32 1, %s1096_s25  ;;  %s30_s6 = sadd.s32 1, %s1100_s26 }
   0xa   : > { %p28_p0 = scmp.ge.s32.totalorder %s27_s30, 2  ;;  %s39_s7 = sadd.s32 1, %s1084_s22 }
   0xb   : > { %p46_p1 = scmp.ne.s32.totalorder %s1084_s22, %s1080_s21  ;;  %p47_p2 = scmp.eq.s32.totalorder %s1104_s27, 0 }
   0xc   : > { %s1408_s30 = smov (%p28_p0, %s27_s30), 0  ;;  %s1410_s6 = smov (!%p28_p0, %s30_s6), %s1100_s26 }
   0xd   : > { %s35_s8 = ssub.s32 %s1096_s25, %s1408_s30  ;;  %p1205_p3 = por %p47_p2, %p46_p1 }
   0xe   : > { %p32_p4 = scmp.ge.s32.totalorder %s1410_s6, 2  ;;  %s156_s10 = sadd.s32 1, %s1076_s20 }
   0xf   : > { %p166_p5 = scmp.ne.s32.totalorder %s1076_s20, %s1072_s19  ;;  %p167_p6 = scmp.eq.s32.totalorder %s838_s28, 3 }
  0x10   : > { %s1412_s6 = smov (%p32_p4, %s1410_s6), 0  ;;  %p172_p8 = scmp.ne.s32.totalorder %s1072_s19, %s1068_s18 }
  0x11   : > { %1393 = sst [smem:[#allocation9_spill]] %s1412_s6  ;;  %p1214_p7 = por %p167_p6, %p166_p5 }
  0x12   : > { %s34_s12 = ssub.s32 %s1100_s26, %s1412_s6  ;;  %p173_p9 = scmp.eq.s32.totalorder %s839_s29, 3 }
  0x13   : > { %s36_s13 = sor.u32 %s35_s8, %s34_s12  ;;  %p154_p10 = scmp.eq.s32.totalorder %s34_s12, 0 }
  0x14   : > { %p37_p11 = scmp.eq.s32.totalorder %s36_s13, 0  ;;  %p1222_p12 = por %p173_p9, %p172_p8 }
  0x15   : > { %s1227_s15 = scalar_select %p154_p10, %s1076_s20, %s156_s10  }
  0x16   : > { %s1230_s16 = scalar_select %p37_p11, %s1084_s22, %s39_s7  }
  0x17   : > { %p841_p13 = scmp.ge.s32.totalorder %s1104_s27, 4 }
  0x19   : > { %198 = sbr.rel (%p841_p13) target bundleno = 57 (0x39), region = 28 }
  0x20   : > { %201 = sbr.rel (!%p1205_p3) target bundleno = 47 (0x2f), region = 32  ;;  %s203_s17 = sand.u32 (%p1205_p3), 1, %s1084_s22  }
  0x21   : > { %s865_s28 = sshll.u32 (%p1205_p3), %s1100_s26, 4  ;;  %s842_s29 = sshll.u32 (%p1205_p3), %s203_s17, 5 }
  0x22   : > { %s208_s8 = sadd.s32 (%p1205_p3), %s1096_s25, %s865_s28  ;;  %s1396_s0 = sld [smem:[#allocation10_spill]] (%p1205_p3) }
  0x23   : > { %s845_s12 = sshll.u32 (%p1205_p3), %s208_s8, 2  ;;  %s205_s7 = scalar_lea.vmem (%p1205_p3), [#allocation4], %s842_s29 }
  0x28   : > { %s210_s10 = scalar_lea.vmem %s1396_s0, %s845_s12 }
  0x29   : > { %v226_v0 = vld [vmem:[%s210_s10] sm:$0xf]  ;;  %v228_v1 = vld [vmem:[%s210_s10 + $0x8] sm:$0xf]  ;;  %v230_v2 = vld [vmem:[%s210_s10 + $0x10] sm:$0xf] }
  0x2a   : > { %227 = vst [vmem:[%s205_s7] sm:$0xf] %v226_v0  ;;  %229 = vst [vmem:[%s205_s7 + $0x4] sm:$0xf] %v228_v1  ;;  %v232_v3 = vld [vmem:[%s210_s10 + $0x18] sm:$0xf] }
  0x2b   : > { %231 = vst [vmem:[%s205_s7 + $0x8] sm:$0xf] %v230_v2  ;;  %v234_v4 = vld [vmem:[%s210_s10 + $0x20] sm:$0xf]  ;;  %v236_v5 = vld [vmem:[%s210_s10 + $0x28] sm:$0xf] }
  0x2c   : > { %233 = vst [vmem:[%s205_s7 + $0xc] sm:$0xf] %v232_v3  ;;  %235 = vst [vmem:[%s205_s7 + $0x10] sm:$0xf] %v234_v4  ;;  %v238_v6 = vld [vmem:[%s210_s10 + $0x30] sm:$0xf] }
  0x2d   : > { %237 = vst [vmem:[%s205_s7 + $0x14] sm:$0xf] %v236_v5  ;;  %v240_v7 = vld [vmem:[%s210_s10 + $0x38] sm:$0xf]  ;;  %239 = vst [vmem:[%s205_s7 + $0x18] sm:$0xf] %v238_v6 }
  0x2e   : > { %241 = vst [vmem:[%s205_s7 + $0x1c] sm:$0xf] %v240_v7 }
  0x2f PF: > { %280 = sbr.rel (!%p1205_p3) target bundleno = 57 (0x39), region = 73  ;;  %s282_s6 = sand.u32 (%p1205_p3), 1, %s1084_s22  }
  0x30   : > { %s866_s17 = sshll.u32 (%p1205_p3), %s1100_s26, 4  ;;  %s846_s28 = sshll.u32 (%p1205_p3), %s282_s6, 6 }
  0x31   : > { %s287_s29 = sadd.s32 (%p1205_p3), %s1096_s25, %s866_s17  ;;  %s284_s10 = scalar_lea.vmem (%p1205_p3), [#allocation5], %s846_s28 }
  0x32   : > { %s849_s8 = sshll.u32 (%p1205_p3), %s287_s29, 3 }
  0x33   : > { %s289_s0 = scalar_lea.vmem (%p1205_p3), %s1385_s1, %s849_s8 }
  0x34   : > { %v331_v8 = vld [vmem:[%s289_s0] sm:$0xff] (%p1205_p3)  ;;  %v333_v9 = vld [vmem:[%s289_s0 + $0x10] sm:$0xff] (%p1205_p3) }
  0x35   : > { %v335_v10 = vld [vmem:[%s289_s0 + $0x20] sm:$0xff] (%p1205_p3)  ;;  %332 = vst [vmem:[%s284_s10] sm:$0xff] (%p1205_p3), %v331_v8  ;;  %334 = vst [vmem:[%s284_s10 + $0x8] sm:$0xff] (%p1205_p3), %v333_v9  ;;  %v337_v11 = vld [vmem:[%s289_s0 + $0x30] sm:$0xff] (%p1205_p3) }
  0x36   : > { %336 = vst [vmem:[%s284_s10 + $0x10] sm:$0xff] %v335_v10  ;;  %v339_v12 = vld [vmem:[%s289_s0 + $0x40] sm:$0xff]  ;;  %v341_v13 = vld [vmem:[%s289_s0 + $0x50] sm:$0xff]  ;;  %338 = vst [vmem:[%s284_s10 + $0x18] sm:$0xff] %v337_v11 }
  0x37   : > { %340 = vst [vmem:[%s284_s10 + $0x20] sm:$0xff] %v339_v12  ;;  %342 = vst [vmem:[%s284_s10 + $0x28] sm:$0xff] %v341_v13  ;;  %v343_v14 = vld [vmem:[%s289_s0 + $0x60] sm:$0xff]  ;;  %v345_v15 = vld [vmem:[%s289_s0 + $0x70] sm:$0xff] }
  0x38   : > { %344 = vst [vmem:[%s284_s10 + $0x30] sm:$0xff] %v343_v14  ;;  %346 = vst [vmem:[%s284_s10 + $0x38] sm:$0xff] %v345_v15 }
  0x39 PF: > { %p850_p0 = scmp.ge.s32.totalorder %s1104_s27, 1  ;;  %p351_p1 = scmp.lt.s32.totalorder %s1104_s27, 5 }
  0x3b   : > { %p352_p2 = pnand %p850_p0, %p351_p1 }
  0x3c   : > { %s358_s9 = sand.u32 (!%p352_p2), 1, %s1080_s21   ;;  %s393_s7 = sand.u32 (!%p352_p2), 1, %s1072_s19  }
  0x3d   : > { %355 = sbr.rel (%p352_p2) target bundleno = 487 (0x1e7), region = 111  ;;  %s851_s6 = sshll.u32 (!%p352_p2), %s358_s9, 5 }
  0x3e   : > { %s852_s17 = sshll.u32 (!%p352_p2), %s358_s9, 6  ;;  %s1255_s28 = sshll.u32 (!%p352_p2), %s393_s7, 3 }
  0x3f   : > { %s1257_s0 = scalar_lea.vmem (!%p352_p2), [#allocation4], %s851_s6  ;;  %s1259_s29 = scalar_lea.vmem (!%p352_p2), [#allocation5], %s852_s17 }
  0x40   : > { %s395_s8 = scalar_lea.vmem (!%p352_p2), [#allocation6], %s1255_s28  ;;  %p854_p3 = scmp.ne.s32.totalorder (!%p352_p2), %s1088_s23, 0 }
  0x44   : > { %402 = sbr.rel (%p854_p3) target bundleno = 75 (0x4b), region = 123  ;;  %vm403_vm0 = vcmask (!%p854_p3), 261120   ;;  %vm405_vm1 = vcmask (!%p854_p3), 7168   ;;  %v1106_v16 = vmov (!%p854_p3), 0.0  }
  0x45   : > { %404 = vst.msk [vmem:[#allocation2] sm:$0xff] (!%p854_p3), %vm403_vm0, %v1106_v16 }
  0x46   : > { %406 = vst.msk [vmem:[#allocation3] sm:$0xff] (!%p854_p3), %vm405_vm1, %v1106_v16 }
  0x4b PF: > { %v425_v17 = vld [vmem:[%s1259_s29 + $0x10] sm:$0xff]  ;;  %vm563_vm2 = vcmask 7168   ;;  %v423_v18 = vld [vmem:[%s1259_s29] sm:$0xff]  ;;  %v426_v19 = vld [vmem:[%s1259_s29 + $0x18] sm:$0xff]  ;;  %v1107_v20 = vmov 0   ;;  %vm545_vm3 = vcmask 1041409  }
  0x4c   : > { %990 = vset.pattern.permute.xlu1 %v1107_v20  ;;  %989 = vset.pattern.permute.xlu0 %v1107_v20  ;;  %v578_v21 = vsel %vm563_vm2, %v425_v17, 0.0  ;;  %v564_v22 = vsel %vm563_vm2, %v423_v18, 0.0  ;;  %v585_v23 = vsel %vm563_vm2, %v426_v19, 0.0  ;;  %v424_v24 = vld [vmem:[%s1259_s29 + $0x8] sm:$0xff]  ;;  %v427_v36 = vld [vmem:[%s1259_s29 + $0x20] sm:$0xff]  ;;  %v430_v37 = vld [vmem:[%s1259_s29 + $0x38] sm:$0xff] }
  0x4d   : > { %444 = vperm.xlu1 %990, %v425_v17   ;;  %v579_v25 = vrot.slane %v578_v21, 4  ;;  %434 = vperm.xlu0 %989, %v423_v18   ;;  %v565_v26 = vrot.slane %v564_v22, 4  ;;  %v586_v27 = vrot.slane %v585_v23, 4  ;;  %v571_v28 = vsel %vm563_vm2, %v424_v24, 0.0  ;;  %v428_v29 = vld [vmem:[%s1259_s29 + $0x28] sm:$0xff]  ;;  %v429_v59 = vld [vmem:[%s1259_s29 + $0x30] sm:$0xff] }
  0x4e   : > { %v572_v30 = vrot.slane %v571_v28, 4  ;;  %v599_v31 = vsel %vm563_vm2, %v428_v29, 0.0  ;;  %v592_v39 = vsel %vm563_vm2, %v427_v36, 0.0  ;;  %v613_v40 = vsel %vm563_vm2, %v430_v37, 0.0  ;;  %p855_p4 = scmp.ne.s32.totalorder %s1088_s23, 1 }
  0x4f   : > { %v580_v32 = vadd.f32 %v579_v25, %v578_v21  ;;  %v566_v33 = vadd.f32 %v565_v26, %v564_v22  ;;  %v587_v34 = vadd.f32 %v586_v27, %v585_v23  ;;  %v600_v35 = vrot.slane %v599_v31, 4  ;;  %v562_v23 = vld [vmem:[#allocation3] sm:$0xff]  ;;  %v883_v27 = vld [vmem:[%s1257_s0 + $0x8] sm:$0xff]  }
  0x50   : > { %v573_v38 = vadd.f32 %v572_v30, %v571_v28  ;;  %v593_v46 = vrot.slane %v592_v39, 4  ;;  %v614_v47 = vrot.slane %v613_v40, 4  ;;  %v606_v63 = vsel %vm563_vm2, %v429_v59, 0.0  ;;  %v868_v28 = vld [vmem:[%s1257_s0] sm:$0xff]  }
  0x51   : > { %v581_v41 = vrot.slane %v580_v32, 2  ;;  %v567_v42 = vrot.slane %v566_v33, 2  ;;  %v588_v43 = vrot.slane %v587_v34, 2  ;;  %449 = vperm.xlu1 %990, %v426_v19   ;;  %439 = vperm.xlu0 %989, %v424_v24   ;;  %v601_v44 = vadd.f32 %v600_v35, %v599_v31 }
  0x52   : > { %v574_v45 = vrot.slane %v573_v38, 2  ;;  %v594_v53 = vadd.f32 %v593_v46, %v592_v39  ;;  %v615_v54 = vadd.f32 %v614_v47, %v613_v40  ;;  %v607_v5 = vrot.slane %v606_v63, 4 }
  0x53   : > { %v582_v48 = vadd.f32 %v581_v41, %v580_v32  ;;  %v568_v49 = vadd.f32 %v567_v42, %v566_v33  ;;  %v589_v50 = vadd.f32 %v588_v43, %v587_v34  ;;  %v602_v51 = vrot.slane %v601_v44, 2 }
  0x54   : > { %v575_v52 = vadd.f32 %v574_v45, %v573_v38  ;;  %v595_v61 = vrot.slane %v594_v53, 2  ;;  %v616_v62 = vrot.slane %v615_v54, 2  ;;  %vm547_vm4 = vcmask 1042434  }
  0x55   : > { %v583_v55 = vrot.slane %v582_v48, 1  ;;  %v569_v56 = vrot.slane %v568_v49, 1  ;;  %v590_v57 = vrot.slane %v589_v50, 1  ;;  %v603_v58 = vadd.f32 %v602_v51, %v601_v44  ;;  %459 = vperm.xlu1 %990, %v428_v29   ;;  %454 = vperm.xlu0 %989, %v427_v36  }
  0x56   : > { %v576_v60 = vrot.slane %v575_v52, 1  ;;  %v596_v4 = vadd.f32 %v595_v61, %v594_v53  ;;  %v617_v7 = vadd.f32 %v616_v62, %v615_v54  ;;  %v608_v10 = vadd.f32 %v607_v5, %v606_v63 }
  0x57   : > { %v584_v0 = vadd.f32 %v583_v55, %v582_v48  ;;  %v570_v1 = vadd.f32 %v569_v56, %v568_v49  ;;  %v591_v2 = vadd.f32 %v590_v57, %v589_v50  ;;  %v604_v6 = vrot.slane %v603_v58, 1  ;;  %v885_v50 = vld [vmem:[%s1257_s0 + $0x18] sm:$0xff]  }
  0x58   : > { %v577_v3 = vadd.f32 %v576_v60, %v575_v52  ;;  %v597_v9 = vrot.slane %v596_v4, 1  ;;  %vm549_vm5 = vcmask 1043459   ;;  %v609_v14 = vrot.slane %v608_v10, 2 }
  0x59   : > { %469 = vperm.xlu1 %990, %v430_v37   ;;  %464 = vperm.xlu0 %989, %v429_v59   ;;  %v605_v15 = vadd.f32 %v604_v6, %v603_v58  ;;  %vm551_vm6 = vcmask 1044484   ;;  %v618_v16 = vrot.slane %v617_v7, 1  ;;  %vm553_vm7 = vcmask 1045509   ;;  %v884_v37 = vld [vmem:[%s1257_s0 + $0x10] sm:$0xff]  }
  0x5a   : > { %v628_v8 = vsel %vm545_vm3, %v577_v3, %v570_v1  ;;  %v598_v12 = vadd.f32 %v597_v9, %v596_v4  ;;  %v610_v18 = vadd.f32 %v609_v14, %v608_v10  ;;  %vm555_vm8 = vcmask 1046534  }
  0x5b   : > { %v629_v11 = vsel %vm547_vm4, %v584_v0, %v628_v8  ;;  %v619_v20 = vadd.f32 %v618_v16, %v617_v7  ;;  %vm557_vm9 = vcmask 1047559   ;;  %v873_v29 = vunpack.c.l.bf16 %v883_v27 }
  0x5c   : > { %v630_v13 = vsel %vm549_vm5, %v591_v2, %v629_v11  ;;  %v611_v19 = vrot.slane %v610_v18, 1  ;;  %v869_v30 = vunpack.c.l.bf16 %v868_v28  ;;  %vm480_vm10 = vcmask 261120  }
  0x5d   : > { %v631_v17 = vsel %vm551_vm6, %v598_v12, %v630_v13  ;;  %v874_v35 = vunpack.c.h.bf16 %v883_v27  ;;  %v870_v36 = vunpack.c.h.bf16 %v868_v28  ;;  %v878_v46 = vunpack.c.h.bf16 %v884_v37 }
  0x5e   : > { %v632_v21 = vsel %vm553_vm7, %v605_v15, %v631_v17  ;;  %v612_v22 = vadd.f32 %v611_v19, %v610_v18  ;;  %v877_v47 = vunpack.c.l.bf16 %v884_v37  ;;  %v882_v61 = vunpack.c.h.bf16 %v885_v50 }
  0x5f   : > { %v881_v62 = vunpack.c.l.bf16 %v885_v50  ;;  %vm1109_vm11 = vmmov (!%p855_p4), 0  }
  0x60   : > { %v633_v24 = vsel %vm555_vm8, %v612_v22, %v632_v21 }
  0x61   : > { %v634_v25 = vsel %vm557_vm9, %v619_v20, %v633_v24 }
  0x62   : > { %v636_v26 = vadd.f32 %v634_v25, %v562_v23 }
  0x64   : > { %637 = vst.msk [vmem:[#allocation3] sm:$0xff] %vm563_vm2, %v636_v26 }
  0xcc   : > { %v445_v31 = vpop.permute.xlu1 %444  ;;  %v435_v32 = vpop.permute.xlu0 %434 }
  0xcd   : > { %v474_v33 = vmul.f32 %v873_v29, %v445_v31  ;;  %v472_v34 = vmul.f32 %v869_v30, %v435_v32 }
  0xcf   : > { %v495_v38 = vsel %vm480_vm10, %v474_v33, 0.0  ;;  %v481_v39 = vsel %vm480_vm10, %v472_v34, 0.0 }
  0xd0   : > { %v496_v40 = vrot.slane %v495_v38, 4  ;;  %v482_v41 = vrot.slane %v481_v39, 4  ;;  %v450_v42 = vpop.permute.xlu1 %449  ;;  %v440_v43 = vpop.permute.xlu0 %439 }
  0xd1   : > { %v475_v44 = vmul.f32 %v874_v35, %v450_v42  ;;  %v473_v45 = vmul.f32 %v870_v36, %v440_v43 }
  0xd2   : > { %v497_v48 = vadd.f32 %v496_v40, %v495_v38  ;;  %v483_v49 = vadd.f32 %v482_v41, %v481_v39 }
  0xd3   : > { %v502_v51 = vsel %vm480_vm10, %v475_v44, 0.0  ;;  %v488_v52 = vsel %vm480_vm10, %v473_v45, 0.0 }
  0xd4   : > { %v498_v53 = vrot.slane %v497_v48, 2  ;;  %v484_v54 = vrot.slane %v483_v49, 2  ;;  %v503_v55 = vrot.slane %v502_v51, 4  ;;  %v489_v56 = vrot.slane %v488_v52, 4  ;;  %v460_v57 = vpop.permute.xlu1 %459  ;;  %v455_v58 = vpop.permute.xlu0 %454 }
  0xd5   : > { %v477_v59 = vmul.f32 %v878_v46, %v460_v57  ;;  %v476_v60 = vmul.f32 %v877_v47, %v455_v58  ;;  %v1108_v57 = vmov (!%p855_p4), 0.0   ;;  %v993_v58 = vld [vmem:[%s1386_s2 + $0x8] sm:$0xff] (!%p855_p4)  }
  0xd6   : > { %v499_v63 = vadd.f32 %v498_v53, %v497_v48  ;;  %v485_v0 = vadd.f32 %v484_v54, %v483_v49  ;;  %v504_v1 = vadd.f32 %v503_v55, %v502_v51  ;;  %v490_v2 = vadd.f32 %v489_v56, %v488_v52  ;;  %v431_v51 = vld [vmem:[#allocation2] sm:$0xff]  ;;  %889 = vmatprep.subr.bf16.mxu0 (!%p855_p4), %v1108_v57 }
  0xd7   : > { %v516_v3 = vsel %vm480_vm10, %v477_v59, 0.0  ;;  %v509_v4 = vsel %vm480_vm10, %v476_v60, 0.0  ;;  %v992_v56 = vld [vmem:[%s1386_s2] sm:$0xff] (!%p855_p4)   ;;  %893 = vmatprep.mubr.msk.bf16.mxu0 (!%p855_p4), %vm1109_vm11, %v1108_v57  ;;  %v648_v60 = vld [vmem:[#allocation3] sm:$0xff] (!%p855_p4) }
  0xd8   : > { %v505_v5 = vrot.slane %v504_v1, 2  ;;  %v491_v6 = vrot.slane %v490_v2, 2  ;;  %v470_v7 = vpop.permute.xlu1 %469  ;;  %v465_v8 = vpop.permute.xlu0 %464  ;;  %v517_v9 = vrot.slane %v516_v3, 4  ;;  %v510_v10 = vrot.slane %v509_v4, 4  ;;  %890 = vmatpush3.bf16.msra.mxu0 (!%p855_p4), %v992_v56 }
  0xd9   : > { %v479_v11 = vmul.f32 %v882_v61, %v470_v7  ;;  %v478_v12 = vmul.f32 %v881_v62, %v465_v8  ;;  %v500_v13 = vrot.slane %v499_v63, 1  ;;  %v486_v14 = vrot.slane %v485_v0, 1  ;;  %891 = vmatprep.subr.bf16.mxu0 (!%p855_p4), %v1108_v57 }
  0xda   : > { %v506_v15 = vadd.f32 %v505_v5, %v504_v1  ;;  %v492_v16 = vadd.f32 %v491_v6, %v490_v2  ;;  %v518_v17 = vadd.f32 %v517_v9, %v516_v3  ;;  %v511_v18 = vadd.f32 %v510_v10, %v509_v4  ;;  %v860_v3 = vld [vmem:[%s1388_s4] ss:$0 sm:$0xff] (!%p855_p4) }
  0xdb   : > { %v530_v19 = vsel %vm480_vm10, %v479_v11, 0.0  ;;  %v523_v20 = vsel %vm480_vm10, %v478_v12, 0.0  ;;  %v487_v27 = vadd.f32 %v486_v14, %v485_v0  ;;  %v501_v31 = vadd.f32 %v500_v13, %v499_v63  ;;  %v856_v63 = vld [vmem:[%s1387_s3] ss:$0 sm:$0xff] (!%p855_p4) }
  0xdc   : > { %v507_v21 = vrot.slane %v506_v15, 1  ;;  %v493_v22 = vrot.slane %v492_v16, 1  ;;  %v531_v23 = vrot.slane %v530_v19, 4  ;;  %v524_v24 = vrot.slane %v523_v20, 4  ;;  %892 = vmatpush3.bf16.msra.mxu0 (!%p855_p4), %v993_v58 }
  0xdd   : > { %v519_v25 = vrot.slane %v518_v17, 2  ;;  %v512_v26 = vrot.slane %v511_v18, 2  ;;  %v1110_v61 = vmov (!%p855_p4), 0  }
  0xde   : > { %v494_v28 = vadd.f32 %v493_v22, %v492_v16  ;;  %v532_v29 = vadd.f32 %v531_v23, %v530_v19  ;;  %v525_v30 = vadd.f32 %v524_v24, %v523_v20  ;;  %v508_v34 = vadd.f32 %v507_v21, %v506_v15  ;;  %991 = vset.pattern.permute.xlu0 (!%p855_p4), %v1110_v61 }
  0xdf   : > { %v520_v32 = vadd.f32 %v519_v25, %v518_v17  ;;  %v513_v33 = vadd.f32 %v512_v26, %v511_v18  ;;  %652 = vperm.xlu0 (!%p855_p4), %991, %v648_v60  }
  0xe0   : > { %v546_v35 = vsel %vm545_vm3, %v494_v28, %v487_v27  ;;  %v533_v36 = vrot.slane %v532_v29, 2  ;;  %v526_v37 = vrot.slane %v525_v30, 2 }
  0xe1   : > { %v548_v38 = vsel %vm547_vm4, %v501_v31, %v546_v35  ;;  %v521_v39 = vrot.slane %v520_v32, 1  ;;  %v514_v40 = vrot.slane %v513_v33, 1 }
  0xe2   : > { %v550_v41 = vsel %vm549_vm5, %v508_v34, %v548_v38  ;;  %v534_v42 = vadd.f32 %v533_v36, %v532_v29  ;;  %v527_v43 = vadd.f32 %v526_v37, %v525_v30 }
  0xe3   : > { %v522_v44 = vadd.f32 %v521_v39, %v520_v32  ;;  %v515_v45 = vadd.f32 %v514_v40, %v513_v33 }
  0xe4   : > { %v535_v46 = vrot.slane %v534_v42, 1  ;;  %v528_v47 = vrot.slane %v527_v43, 1 }
  0xe5   : > { %v552_v48 = vsel %vm551_vm6, %v515_v45, %v550_v41 }
  0xe6   : > { %v536_v49 = vadd.f32 %v535_v46, %v534_v42  ;;  %v529_v50 = vadd.f32 %v528_v47, %v527_v43  ;;  %v554_v52 = vsel %vm553_vm7, %v522_v44, %v552_v48  ;;  %641 = sbr.rel (%p855_p4) target bundleno = 463 (0x1cf), region = 127 }
  0xe8   : > { %v556_v53 = vsel %vm555_vm8, %v529_v50, %v554_v52 }
  0xe9   : > { %v558_v54 = vsel %vm557_vm9, %v536_v49, %v556_v53 }
  0xea   : > { %v560_v55 = vadd.f32 %v558_v54, %v431_v51 }
  0xec   : > { %561 = vst.msk [vmem:[#allocation2] sm:$0xff] %vm480_vm10, %v560_v55 }
  0xf3   : > { %v642_v59 = vld [vmem:[#allocation2] sm:$0xff] }
  0xf4   : > { %v643_v62 = vpack.c.bf16 %v642_v59, %v642_v59 }
  0xf6   : > { %894 = vmatmul.mubr.msk.bf16.vlgmr.msra.gmra.mrb[0].mxu0 %vm480_vm10, %v643_v62 }
 0x15e   : > { %v653_v0 = vpop.permute.xlu0 %652 }
 0x15f   : > { %v661_v1 = vmul.f32 %v856_v63, %v653_v0 }
 0x1c9   : > { %v711_v2 = vpop.f32.mrb[0].mxu0 }
 0x1ca   : > { %v712_v4 = vadd.f32 %v711_v2, %v661_v1  ;;  %v895_v5 = vpop.f32.mrb[1].mxu0 }
 0x1cb   : > { %v714_v6 = vpop.f32.mrb[2].mxu0 }
 0x1cc   : > { %v724_v7 = vadd.f32 %v860_v3, %v712_v4  ;;  %v896_v8 = vpop.f32.mrb[3].mxu0 }
 0x1ce   : > { %725 = vst [vmem:[%s395_s8] sm:$0xff] %v724_v7 }
 0x1cf PF: > { %s862_s0 = sshll.u32 %s1092_s24, 7  ;;  %s740_s13 = sshll.u32 %s395_s8, 4  ;;  %s741_s13 = int_to_ptr.vmem [resolvable:$true] %s740_s13 }
 0x1d0   : > { %s1327_s12 = scalar_lea.hbm %s1389_s5, %s862_s0  ;;  %s727_s10 = scalar_lea.sflag [#allocation7], %s393_s7 }
 0x1d1   : > { %s994_s23 = scalar_lea.vmem %s741_s13, 128  ;;  %s1111_s9 = smov [#allocation6]  }
 0x1d2   : > { %p995_p5 = scmp.ne.s32.totalorder %s741_s13, %s994_s23  ;;  %s998_s6 = sshll.u32 %s1111_s9, 4  ;;  %s999_s6 = int_to_ptr.vmem [resolvable:$false] %s998_s6 }
 0x1d3   : > { %s1000_s17 = scalar_lea.vmem %s999_s6, 256  ;;  %p1001_p9 = scmp.lt.s32.totalorder %s741_s13, %s999_s6 }
 0x1d4   : > { %p996_p6 = pnand %p995_p5, %p1214_p7  ;;  %p1002_p10 = scmp.lt.s32.totalorder %s1000_s17, %s994_s23 }
 0x1d6   : > { %p997_p8 = pneg %p996_p6  ;;  %p1003_p11 = por %p1002_p10, %p1001_p9 }
 0x1d8   : > { %p1004_p13 = pnand %p1003_p11, %p997_p8 }
 0x1da   : > { %1007 = shalt.err (!%p1004_p13)
}
 0x1db   : > { %s1008_s24 = scalar_lea.hbm %s1327_s12, 128  ;;  %s1012_s8 = scalar_lea.hbm %s1389_s5, 256 }
 0x1dc   : > { %p1009_p0 = scmp.ne.s32.totalorder %s1327_s12, %s1008_s24  ;;  %p1013_p3 = scmp.lt.u32.totalorder %s1327_s12, %s1389_s5 }
 0x1dd   : > { %p1014_p4 = scmp.lt.u32.totalorder %s1012_s8, %s1008_s24  ;;  %p1016_p6 = scmp.lt.u32.totalorder %s1008_s24, %s1327_s12 }
 0x1de   : > { %p1010_p1 = pnand %p1009_p0, %p1214_p7 }
 0x1df   : > { %p1015_p5 = por %p1014_p4, %p1013_p3 }
 0x1e0   : > { %p1011_p2 = pneg %p1010_p1 }
 0x1e1   : > { %p1017_p8 = por %p1016_p6, %p1015_p5 }
 0x1e3   : > { %p1018_p9 = pnand %p1017_p8, %p1011_p2 }
 0x1e5   : > { %1021 = shalt.err (!%p1018_p9)
}
 0x1e6   : > { %897 = dma.vmem_to_hbm [thread:$0]  (%p1214_p7), %s741_s13, 128, %s1327_s12, %s727_s10  }
 0x1e7 PF: > { %p903_p10 = scmp.ge.s32.totalorder %s1104_s27, 2  ;;  %s752_s21 = sand.u32 1, %s1068_s18  }
 0x1e8   : > { %s753_s23 = scalar_lea.sflag [#allocation7], %s752_s21 }
 0x1e9   : > { %p900_p11 = pnand %p903_p10, %p1222_p12 }
 0x1eb   : > { %1063 = dma.done.wait (!%p900_p11), %s753_s23, 128  }
 0x1ec   : > { %1065 = vsyncadd (!%p900_p11), %s753_s23, 4294967168  ;;  %s18_s27 = sadd.s32 1, %s1104_s27   ;;  %s1397_s11 = sld [smem:[#allocation9_spill]] }
 0x1ed   : > { %p15_p13 = scmp.ge.s32.totalorder %s18_s27, 6   ;;  %s1398_s18 = smov %s1072_s19 }
 0x1ee   : > { %s1399_s19 = smov %s1076_s20  ;;  %s1400_s20 = smov %s1227_s15 }
 0x1ef   : > { %s1401_s21 = smov %s1084_s22  ;;  %s1402_s22 = smov %s1230_s16 }
 0x1f0   : > { %s1403_s23 = smov %s1096_s25  ;;  %s1404_s24 = smov %s1100_s26 }
 0x1f1   : > { %s1405_s25 = smov %s1408_s30  ;;  %17 = sbr.rel (!%p15_p13) target bundleno = 8 (0x8), region = 175 }
 0x1f2   : > { %s1406_s26 = smov %s1397_s11 }
 0x1f8   :  { %758 = vsyncpa [#allocation7], 1 }
 0x1f9   :  { %760 = vsyncpa [#allocation7 + $0x1], 1 }

</bundles_post_ra>
